<compile_context>
chip_gen: v5e
topology: v5e:2x2
jax: 0.10.0
libtpu: 0.0.40
codegen_flags: <defaults>
</compile_context>

<pallas_src>
import math

import jax
import jax.numpy as jnp
from jax.experimental import pallas as pl
from jax.experimental.pallas import tpu as pltpu


def _attn_encoder_kernel(x_ref, mask_ref, w_ref, o_ref):
    """x_ref: (Bt, L, D); mask_ref: (Bt, L); w_ref: (1, D); o_ref: (Bt, D)."""
    x = x_ref[...].astype(jnp.float32)            # (Bt, L, D)
    mask = mask_ref[...].astype(jnp.float32)      # (Bt, L)
    w = w_ref[...].astype(jnp.float32)            # (1, D)

    # attn_linear(x): per-token dot product with w along d_hid (lane reduce).
    scores = jnp.sum(x * w[None, :, :], axis=-1)  # (Bt, L)

    # additive mask, exactly as in the PyTorch forward.
    scores = scores - (1.0 - mask) * 100000000.0

    # softmax over the sequence axis (PyTorch dim=1).
    m = jnp.max(scores, axis=-1, keepdims=True)
    e = jnp.exp(scores - m)
    denom = jnp.sum(e, axis=-1, keepdims=True)
    p = e * pl.reciprocal(denom, approx=True)     # EUP reciprocal; frees VALU

    # weighted pooling over the sequence: (Bt, L, D) * (Bt, L, 1) -> (Bt, D).
    out = jnp.sum(x * p[:, :, None], axis=1)
    o_ref[...] = out.astype(o_ref.dtype)


def attn_encoder(x, x_mask, w, *, b_tile=None):
    """x: (B, L, d_hid); x_mask: (B, L) of 0/1; w: (d_hid,) == Linear.weight[0].

    Returns (B, d_hid), matching AttnEncoder.forward.
    """
    B, L, D = x.shape
    if b_tile is None:
        # whole batch per program when small; multiples of 8 sublanes otherwise.
        b_tile = B if B <= 8 else 8

    w2 = w.reshape(1, D)
    mask_f = x_mask.astype(jnp.float32)

    return pl.pallas_call(
        _attn_encoder_kernel,
        out_shape=jax.ShapeDtypeStruct((B, D), x.dtype),
        grid_spec=pltpu.PrefetchScalarGridSpec(
            num_scalar_prefetch=0,
            grid=(pl.cdiv(B, b_tile),),
            in_specs=[
                pl.BlockSpec((b_tile, L, D), lambda i: (i, 0, 0)),  # x (lane-dense)
                pl.BlockSpec((b_tile, L), lambda i: (i, 0)),        # mask (lane-major)
                pl.BlockSpec((1, D), lambda i: (0, 0)),             # w (broadcast)
            ],
            out_specs=pl.BlockSpec((b_tile, D), lambda i: (i, 0)),
        ),
        compiler_params=pltpu.CompilerParams(
            dimension_semantics=("parallel",)),
    )(x, mask_f, w2)


def reference(x, x_mask, w):
    """Pure-JAX mirror of the PyTorch forward."""
    scores = jnp.einsum('bld,d->bl', x, w)
    scores = scores - (1.0 - x_mask) * 100000000.0
    p = jax.nn.softmax(scores, axis=1)
    return jnp.sum(x * p[:, :, None], axis=1)


if __name__ == "__main__":
    B, L, D = 2, 8, 32   # (batch, seq_len, d_hid)

    key0 = jax.random.PRNGKey(0)
    kx, kw = jax.random.split(key0, 2)
    x = jax.random.normal(kx, (B, L, D), jnp.float32)

    # nn.Linear(d_hid, 1, bias=False) weight, stored squeezed as (d_hid,)
    bound = 1.0 / math.sqrt(D)
    w = jax.random.uniform(kw, (D,), jnp.float32, -bound, bound)

    # mask: batch 0 fully valid, batch 1 has 3 padded positions at the end
    mask = jnp.array([[1.0] * L,
                      [1.0] * (L - 3) + [0.0] * 3], dtype=jnp.float32)

    out = attn_encoder(x, mask, w)
    out = jax.block_until_ready(out)

    ref = reference(x, mask, w)
    assert out.shape == (B, D)
    # approx=True reciprocal (EUP) carries ~2^-12 relative error -> slightly
    # looser tolerance than exact-divide would need.
    assert jnp.allclose(out, ref, atol=2e-3, rtol=2e-3), \
        f"max abs err {jnp.max(jnp.abs(out - ref))}"

    print("KERNEL_OK")
</pallas_src>

<mosaic_0001>
module attributes {stable_mosaic.version = 11 : i64} {
  func.func @_attn_encoder_kernel(%arg0: i32, %arg1: memref<2x8x32xf32, #tpu.memory_space<vmem>>, %arg2: memref<2x8xf32, #tpu.memory_space<vmem>>, %arg3: memref<1x32xf32, #tpu.memory_space<vmem>>, %arg4: memref<2x32xf32, #tpu.memory_space<vmem>>) attributes {dimension_semantics = [#tpu.dimension_semantics<parallel>], iteration_bounds = array<i64: 1>, scalar_prefetch = 0 : i64, scratch_operands = 0 : i64, tpu.core_type = #tpu.core_type<tc>, window_params = [{transform_indices = @transform_0, window_bounds = array<i64: 2, 8, 32>}, {transform_indices = @transform_1, window_bounds = array<i64: 2, 8>}, {pipeline_mode = #tpu.pipeline_mode<synchronous>, transform_indices = @transform_2, window_bounds = array<i64: 1, 32>}, {transform_indices = @transform_3, window_bounds = array<i64: 2, 32>}]} {
    %c0 = arith.constant 0 : index
    %c0_0 = arith.constant 0 : index
    %c0_1 = arith.constant 0 : index
    %0 = vector.load %arg1[%c0, %c0_0, %c0_1] : memref<2x8x32xf32, #tpu.memory_space<vmem>>, vector<2x8x32xf32>
    %c0_2 = arith.constant 0 : index
    %c0_3 = arith.constant 0 : index
    %1 = vector.load %arg2[%c0_2, %c0_3] : memref<2x8xf32, #tpu.memory_space<vmem>>, vector<2x8xf32>
    %c0_4 = arith.constant 0 : index
    %c0_5 = arith.constant 0 : index
    %2 = vector.load %arg3[%c0_4, %c0_5] : memref<1x32xf32, #tpu.memory_space<vmem>>, vector<1x32xf32>
    %3 = vector.shape_cast %2 : vector<1x32xf32> to vector<1x1x32xf32>
    %4 = vector.broadcast %3 : vector<1x1x32xf32> to vector<2x8x32xf32>
    %5 = arith.mulf %0, %4 : vector<2x8x32xf32>
    %cst = arith.constant dense<0.000000e+00> : vector<2x8xf32>
    %6 = vector.multi_reduction <add>, %5, %cst [2] : vector<2x8x32xf32> to vector<2x8xf32>
    %cst_6 = arith.constant 1.000000e+00 : f32
    %7 = vector.broadcast %cst_6 : f32 to vector<2x8xf32>
    %8 = arith.subf %7, %1 : vector<2x8xf32>
    %cst_7 = arith.constant 1.000000e+08 : f32
    %9 = vector.broadcast %cst_7 : f32 to vector<2x8xf32>
    %10 = arith.mulf %8, %9 : vector<2x8xf32>
    %11 = arith.subf %6, %10 : vector<2x8xf32>
    %cst_8 = arith.constant dense<0xFF800000> : vector<2xf32>
    %12 = vector.multi_reduction <maximumf>, %11, %cst_8 [1] : vector<2x8xf32> to vector<2xf32>
    %13 = vector.shape_cast %12 : vector<2xf32> to vector<2x1xf32>
    %14 = vector.broadcast %13 : vector<2x1xf32> to vector<2x8xf32>
    %15 = arith.subf %11, %14 : vector<2x8xf32>
    %16 = math.exp %15 : vector<2x8xf32>
    %cst_9 = arith.constant dense<0.000000e+00> : vector<2xf32>
    %17 = vector.multi_reduction <add>, %16, %cst_9 [1] : vector<2x8xf32> to vector<2xf32>
    %18 = vector.shape_cast %17 : vector<2xf32> to vector<2x1xf32>
    %19 = tpu.reciprocal %18 {approx = true} : vector<2x1xf32> -> vector<2x1xf32>
    %20 = vector.broadcast %19 : vector<2x1xf32> to vector<2x8xf32>
    %21 = arith.mulf %16, %20 : vector<2x8xf32>
    %22 = vector.shape_cast %21 : vector<2x8xf32> to vector<2x8x1xf32>
    %23 = vector.broadcast %22 : vector<2x8x1xf32> to vector<2x8x32xf32>
    %24 = arith.mulf %0, %23 : vector<2x8x32xf32>
    %cst_10 = arith.constant dense<0.000000e+00> : vector<2x32xf32>
    %25 = vector.multi_reduction <add>, %24, %cst_10 [1] : vector<2x8x32xf32> to vector<2x32xf32>
    %c0_11 = arith.constant 0 : index
    %c0_12 = arith.constant 0 : index
    %26 = vector.load %arg4[%c0_11, %c0_12] : memref<2x32xf32, #tpu.memory_space<vmem>>, vector<2x32xf32>
    tpu.vector_store %arg4[%c0_11, %c0_12], %25 {strides = array<i32>} : memref<2x32xf32, #tpu.memory_space<vmem>>, vector<2x32xf32>,
    return
  }
  func.func @transform_0(%arg0: i32) -> (i32, i32, i32) {
    %c0_i32 = arith.constant 0 : i32
    %c0_i32_0 = arith.constant 0 : i32
    %c0_i32_1 = arith.constant 0 : i32
    return %arg0, %c0_i32, %c0_i32_0 : i32, i32, i32
  }
  func.func @transform_1(%arg0: i32) -> (i32, i32) {
    %c0_i32 = arith.constant 0 : i32
    %c0_i32_0 = arith.constant 0 : i32
    return %arg0, %c0_i32 : i32, i32
  }
  func.func @transform_2(%arg0: i32) -> (i32, i32) {
    %c0_i32 = arith.constant 0 : i32
    %c0_i32_0 = arith.constant 0 : i32
    %c0_i32_1 = arith.constant 0 : i32
    return %c0_i32, %c0_i32_0 : i32, i32
  }
  func.func @transform_3(%arg0: i32) -> (i32, i32) {
    %c0_i32 = arith.constant 0 : i32
    %c0_i32_0 = arith.constant 0 : i32
    return %arg0, %c0_i32 : i32, i32
  }
}

</mosaic_0001>

<bundles_post_ra>
// kernel: tpu_custom_call.1
= control target key start
LH: loop header
LB: loop body
LE: loop exit
PB: predicated region body
PF: predicated region fallthrough
CT: control target
= control target key end

     0   :  { %8 = vsyncpa [#allocation3], 0  ;;  %s335_s0 = inlined_call_operand.hbm [shape: f32[2,8,32], index: 0, kind: input, shape index: {}]   ;;  %s336_s1 = inlined_call_operand.hbm [shape: f32[2,8], index: 1, kind: input, shape index: {}]   ;;  %s337_s2 = inlined_call_operand.vmem [shape: f32[1,32], index: 2, kind: input, shape index: {}]   ;;  %s338_s3 = inlined_call_operand.hbm [shape: f32[2,32], index: 3, kind: output, shape index: {}]  }
   0x1   :  { %9 = vsyncpa [#allocation6], 0 }
   0x2   :  { %10 = vsyncpa [#allocation4], 0  ;;  %s15_s14 = sshll.u32 %s335_s0, 4  ;;  %s280_s15 = smov [#allocation2]   ;;  %s16_s14 = int_to_ptr.hbm [resolvable:$true] %s15_s14 }
   0x3   :  { %s17_s16 = sshll.u32 %s280_s15, 4  ;;  %s29_s19 = sshll.u32 %s336_s1, 4  ;;  %s18_s16 = int_to_ptr.vmem [resolvable:$true] %s17_s16  ;;  %s30_s19 = int_to_ptr.hbm [resolvable:$true] %s29_s19 }
   0x4   :  { %s281_s20 = smov 128   ;;  %s282_s21 = smov 8  }
   0x5   :  { %23 = dma.hbm_to_vmem [thread:$0]  %s16_s14, 256, %s18_s16, [#allocation3], %s281_s20, %s281_s20, %s282_s21  }
   0x6   :  { %s283_s22 = smov [#allocation5]  }
   0x7   :  { %s31_s23 = sshll.u32 %s283_s22, 4  ;;  %s32_s23 = int_to_ptr.vmem [resolvable:$true] %s31_s23 }
   0x8   :  { %34 = dma.hbm_to_vmem [thread:$0]  %s30_s19, 32, %s32_s23, [#allocation6]  }
   0x9   :  { %274 = dma.done.wait [#allocation3], 256  }
   0xa   :  { %275 = vsyncadd [#allocation3], 4294967040 }
   0xb   :  { %276 = dma.done.wait [#allocation6], 32  }
   0xc   :  { %277 = vsyncadd [#allocation6], 4294967264  ;;  %v65_v0 = vlaneseq  ;;  %v312_v2 = vld [vmem:[#allocation2] sm:$0xff]  ;;  %vm54_vm0 = vcmask 261120   ;;  %v47_v4 = vld [vmem:[#allocation5] sm:$0x3] }
   0xd   :  { %v195_v3 = vld [vmem:[%s337_s2] ss:$0 sm:$0xff]  ;;  %v61_v6 = vsub.f32 1.0, %v47_v4  ;;  %v318_v7 = vld [vmem:[#allocation2 + $0x8] sm:$0xff]  ;;  %v284_v14 = vmov 0   ;;  %vm94_vm1 = vcmask 1041409  }
   0xe   :  { %v66_v1 = vshrl.u32 %v65_v0, 7  ;;  %v52_v5 = vmul.f32 %v195_v3, %v312_v2  ;;  %v53_v11 = vmul.f32 %v195_v3, %v318_v7  ;;  %192 = vset.pattern.permute.xlu2 %v284_v14  ;;  %194 = vset.pattern.permute.xlu0 %v284_v14  ;;  %v91_v22 = vand.u32 127, %v65_v0  ;;  %s285_s1 = smov [#allocation7]   ;;  %s174_s27 = sshll.u32 %s338_s3, 4  ;;  %s175_s27 = int_to_ptr.hbm [resolvable:$true] %s174_s27 }
   0xf   :  { %v62_v9 = vmul.f32 1e+08, %v61_v6  ;;  %vm97_vm2 = vcmask 58368   ;;  %s172_s2 = sshll.u32 %s285_s1, 4  ;;  %vm165_vm3 = vcmask 254976   ;;  %s173_s2 = int_to_ptr.vmem [resolvable:$true] %s172_s2 }
  0x10   :  { %191 = vset.pattern.permute.xlu1 %v66_v1  ;;  %v55_v8 = vsel %vm54_vm0, %v52_v5, 0.0  ;;  %v58_v12 = vsel %vm54_vm0, %v53_v11, 0.0 }
  0x11   :  { %56 = vadd.xlane.f32.xlu0 %v55_v8  ;;  %v64_v10 = vperm.slane %v62_v9, 0  ;;  %v71_v13 = vperm.slane %v62_v9, 1 }
  0x18   :  { %69 = vperm.xlu1 %191, %v64_v10  }
  0x19   :  { %59 = vadd.xlane.f32.xlu0 %v58_v12 }
  0x20   :  { %76 = vperm.xlu1 %191, %v71_v13  }
  0x28   :  { %193 = vset.pattern.permute.xlu1 %v284_v14 }
  0x84   :  { %v57_v15 = vpop.xlane.xlu0 %56 }
  0x8a   :  { %v70_v16 = vpop.permute.xlu1 %69 }
  0x8b   :  { %v80_v17 = vsub.f32 %v57_v15, %v70_v16 }
  0x8c   :  { %v60_v18 = vpop.xlane.xlu0 %59 }
  0x8d   :  { %85 = vperm.xlu2 %192, %v80_v17  }
  0x92   :  { %v77_v19 = vpop.permute.xlu1 %76 }
  0x93   :  { %v81_v20 = vsub.f32 %v60_v18, %v77_v19 }
  0x95   :  { %88 = vperm.xlu2 %192, %v81_v20  }
  0xe7   :  { %v86_v21 = vpop.permute.xlu2 %85 }
  0xe8   :  { %v92_v24 = vperm.slane %v86_v21, %v91_v22 }
  0xef   :  { %v89_v23 = vpop.permute.xlu2 %88 }
  0xf0   :  { %v93_v25 = vperm.slane %v89_v23, %v91_v22 }
  0xf2   :  { %v95_v26 = vsel %vm94_vm1, %v93_v25, %v92_v24 }
  0xf3   :  { %v98_v27 = vsel %vm97_vm2, %v95_v26, -inf }
  0xf4   :  { %99 = vmax.xlane.f32.xlu0 %v98_v27 }
 0x167   :  { %v100_v28 = vpop.xlane.xlu0 %99 }
 0x168   :  { %v102_v29 = vperm.slane %v100_v28, 0  ;;  %v103_v30 = vperm.slane %v100_v28, 1 }
 0x16a   :  { %v106_v31 = vsub.f32 %v80_v17, %v102_v29  ;;  %v107_v32 = vsub.f32 %v81_v20, %v103_v30 }
 0x16c   :  { %v108_v33 = vmul.f32 1.442695, %v106_v31  ;;  %v110_v34 = vmul.f32 1.442695, %v107_v32 }
 0x16e   :  { %196 = vpow2.f32 %v108_v33 }
 0x16f   :  { %198 = vpow2.f32 %v110_v34 }
 0x174   :  { %v197_v35 = vpop.eup %196 }
 0x175   :  { %v199_v36 = vpop.eup %198  ;;  %115 = vperm.xlu1 %193, %v197_v35  }
 0x176   :  { %118 = vperm.xlu2 %192, %v199_v36  }
 0x1d0   :  { %v119_v37 = vpop.permute.xlu2 %118 }
 0x1d1   :  { %v121_v39 = vperm.slane %v119_v37, %v91_v22 }
 0x1e7   :  { %v116_v38 = vpop.permute.xlu1 %115 }
 0x1e8   :  { %v120_v40 = vperm.slane %v116_v38, %v91_v22 }
 0x1ea   :  { %v122_v41 = vsel %vm94_vm1, %v121_v39, %v120_v40 }
 0x1eb   :  { %v124_v42 = vsel %vm97_vm2, %v122_v41, 0.0 }
 0x1ec   :  { %125 = vadd.xlane.f32.xlu0 %v124_v42 }
 0x25f   :  { %v126_v43 = vpop.xlane.xlu0 %125 }
 0x260   :  { %200 = vrcp.f32 %v126_v43 }
 0x266   :  { %v201_v44 = vpop.eup %200 }
 0x267   :  { %v130_v45 = vperm.slane %v201_v44, 1  ;;  %v129_v46 = vperm.slane %v201_v44, 0 }
 0x269   :  { %v134_v47 = vmul.f32 %v199_v36, %v130_v45  ;;  %v133_v48 = vmul.f32 %v197_v35, %v129_v46 }
 0x26b   :  { %142 = vperm.xlu2 %192, %v134_v47   ;;  %137 = vperm.xlu1 %193, %v133_v48  }
 0x2c5   :  { %v143_v49 = vpop.permute.xlu2 %142 }
 0x2c6   :  { %v146_v50 = vmul.f32 %v143_v49, %v318_v7 }
 0x2c8   :  { %v154_v51 = vsel %vm54_vm0, %v146_v50, 0.0 }
 0x2c9   :  { %v155_v52 = vrot.slane %v154_v51, 4 }
 0x2cb   :  { %v156_v53 = vadd.f32 %v155_v52, %v154_v51 }
 0x2cd   :  { %v157_v56 = vrot.slane %v156_v53, 2 }
 0x2cf   :  { %v158_v59 = vadd.f32 %v157_v56, %v156_v53 }
 0x2d1   :  { %v159_v62 = vrot.slane %v158_v59, 1 }
 0x2d3   :  { %v160_v1 = vadd.f32 %v159_v62, %v158_v59 }
 0x2dd   :  { %v138_v54 = vpop.permute.xlu1 %137 }
 0x2de   :  { %v145_v55 = vmul.f32 %v138_v54, %v312_v2 }
 0x2e0   :  { %v147_v57 = vsel %vm54_vm0, %v145_v55, 0.0 }
 0x2e1   :  { %v148_v58 = vrot.slane %v147_v57, 4 }
 0x2e3   :  { %v149_v60 = vadd.f32 %v148_v58, %v147_v57 }
 0x2e5   :  { %v150_v61 = vrot.slane %v149_v60, 2 }
 0x2e7   :  { %v151_v63 = vadd.f32 %v150_v61, %v149_v60 }
 0x2e9   :  { %v152_v0 = vrot.slane %v151_v63, 1 }
 0x2eb   :  { %v153_v3 = vadd.f32 %v152_v0, %v151_v63 }
 0x2ed   :  { %v163_v2 = vsel %vm94_vm1, %v160_v1, %v153_v3 }
 0x2ee   :  { %166 = vst.msk [vmem:[#allocation7] sm:$0x3] %vm165_vm3, %v163_v2 }
 0x2ef   :  { %177 = dma.vmem_to_hbm [thread:$0]  %s173_s2, 32, %s175_s27, [#allocation4]  }
 0x2f0   :  { %278 = dma.done.wait [#allocation4], 32  }
 0x2f1   :  { %279 = vsyncadd [#allocation4], 4294967264 }
 0x2f2   :  { %182 = vsyncpa [#allocation3], 1 }
 0x2f3   :  { %183 = vsyncpa [#allocation6], 1 }
 0x2f4   :  { %184 = vsyncpa [#allocation4], 1 }

</bundles_post_ra>
